<compile_context>
chip_gen: v7x
topology: tpu7x:2x2x1
jax: 0.10.0
libtpu: 0.0.40
codegen_flags: <defaults>
</compile_context>

<pallas_src>
import functools

import jax
import jax.numpy as jnp
from jax.experimental import pallas as pl
from jax.experimental.pallas import tpu as pltpu


def _round_up(x, m):
    return ((x + m - 1) // m) * m


def _patch_embed_kernel(x_ref, w_ref, b_ref, o_ref):
    # x_ref: (tm, K) bf16 patch rows, w_ref: (K, E) bf16, b_ref: (1, E) f32,
    # o_ref: (tm, E) out_dtype.  MXU matmul, f32 accumulate, f32 bias add,
    # cast only on the final store.
    acc = jnp.dot(x_ref[...], w_ref[...], preferred_element_type=jnp.float32)
    o_ref[...] = (acc + b_ref[...]).astype(o_ref.dtype)


def patch_embed_forward(x, weight, bias, p_t, p_h, p_w, *, tm=512,
                        compute_dtype=jnp.bfloat16, out_dtype=jnp.bfloat16):
    """x: (B, C, T, H, W).  weight: (E, C, p_t, p_h, p_w).  bias: (E,)."""
    B, C, T, H, W = x.shape
    E = weight.shape[0]
    Tp, Hp, Wp = T // p_t, H // p_h, W // p_w
    K = C * p_t * p_h * p_w
    M = B * Tp * Hp * Wp

    # ---- patchify glue (marked fusible into the Pallas input DMA) ---------
    # Cast to the narrow compute dtype before the transpose so that even if
    # XLA does materialize it, the round trip is half-width.
    xc = x.astype(compute_dtype)
    xp = xc.reshape(B, C, Tp, p_t, Hp, p_h, Wp, p_w)
    # -> (B, Tp, Hp, Wp, C, p_t, p_h, p_w): channel-major inside the patch so
    # rows match Conv3d's weight layout (E, C, kt, kh, kw).
    xp = xp.transpose(0, 2, 4, 6, 1, 3, 5, 7)
    patches = xp.reshape(M, K)                               # (M, K) bf16

    w2d = weight.reshape(E, K).T.astype(compute_dtype)       # (K, E) bf16
    b2d = bias.reshape(1, E).astype(jnp.float32)             # (1, E) f32

    # ---- lane padding only when it actually helps --------------------------
    # E < 128: keep native width (block dim == full array dim is legal; the
    # masked store is far cheaper than 4x the write traffic + a slice pass).
    if E >= 128 and E % 128 != 0:
        E_out = _round_up(E, 128)
        w2d = jnp.pad(w2d, ((0, 0), (0, E_out - E)))
        b2d = jnp.pad(b2d, ((0, 0), (0, E_out - E)))
    else:
        E_out = E

    # ---- row tiling --------------------------------------------------------
    in_b = jnp.dtype(compute_dtype).itemsize
    out_b = jnp.dtype(out_dtype).itemsize
    # Cap tm so the parallel grid axis has >= ~8 steps (v7x megacore balance +
    # pipeline overlap); round to the bf16 sublane quantum (16 rows).
    tm_cap = max(16, _round_up(pl.cdiv(M, 8), 16))
    tm = max(16, min(_round_up(tm, 16), tm_cap, _round_up(M, 16)))

    def _vmem_need(t):
        return (2 * t * K * in_b            # double-buffered patch tiles
                + 2 * t * E_out * out_b     # double-buffered output tiles
                + 2 * K * E_out * in_b      # resident weight
                + 2 * 8 * E_out * 4)        # resident bias (padded rows)

    # Keep the working set comfortably inside v5e's 16 MiB default scope and
    # far below v7x's 64 MiB physical VMEM.
    while tm > 16 and _vmem_need(tm) > 12 * 1024 * 1024:
        tm = max(16, _round_up(tm // 2, 16))
    vmem_limit = int(min(max(32 * 1024 * 1024,
                             _vmem_need(tm) + 8 * 1024 * 1024),
                         60 * 1024 * 1024))

    grid = (pl.cdiv(M, tm),)   # ragged tail handled by Pallas boundary masking

    cost = pl.CostEstimate(
        flops=2 * M * K * E_out,
        transcendentals=0,
        bytes_accessed=(M * K * in_b          # patch stream (bf16)
                        + K * E_out * in_b    # resident weight
                        + E_out * 4           # bias
                        + M * E_out * out_b)) # bf16 output writeback

    out = pl.pallas_call(
        _patch_embed_kernel,
        out_shape=jax.ShapeDtypeStruct((M, E_out), out_dtype),
        grid_spec=pltpu.PrefetchScalarGridSpec(
            num_scalar_prefetch=0,
            grid=grid,
            in_specs=[
                pl.BlockSpec((tm, K), lambda i: (i, 0)),      # patch rows
                pl.BlockSpec((K, E_out), lambda i: (0, 0)),   # weight (resident)
                pl.BlockSpec((1, E_out), lambda i: (0, 0)),   # bias (resident)
            ],
            out_specs=pl.BlockSpec((tm, E_out), lambda i: (i, 0)),
        ),
        compiler_params=pltpu.CompilerParams(
            dimension_semantics=("parallel",),        # megacore split on v7x
            allow_input_fusion=[True, False, False],  # fuse patchify into DMA
            vmem_limit_bytes=vmem_limit),
        cost_estimate=cost,
    )(patches, w2d, b2d)

    if E_out != E:
        out = out[:, :E]
    # rearrange 'b c t h w -> (b t) (h w) c'
    return out.reshape(B * Tp, Hp * Wp, E)


if __name__ == "__main__":
    # Module config (small): width=16, height=16, p_w=4, p_h=4, p_t=2,
    # channels=4, embed_dims=32.  Input video: (B=2, C=4, T=4, H=16, W=16).
    B, C, T, H, W = 2, 4, 4, 16, 16
    p_t, p_h, p_w = 2, 4, 4
    E = 32

    key = jax.random.PRNGKey(0)
    kx, kw = jax.random.split(key)
    x = jax.random.normal(kx, (B, C, T, H, W), dtype=jnp.float32)

    # Deterministic init matching nn.init.trunc_normal_ (std=1, truncated to
    # [-2, 2]) and zero bias.
    weight = jax.random.truncated_normal(
        kw, -2.0, 2.0, (E, C, p_t, p_h, p_w), dtype=jnp.float32)
    bias = jnp.zeros((E,), dtype=jnp.float32)

    fwd = jax.jit(functools.partial(patch_embed_forward,
                                    p_t=p_t, p_h=p_h, p_w=p_w))
    out = jax.block_until_ready(fwd(x, weight, bias))

    # Pure-JAX f32 reference (patchify-matmul == Conv3d with stride == kernel).
    Tp, Hp, Wp = T // p_t, H // p_h, W // p_w
    xp = x.reshape(B, C, Tp, p_t, Hp, p_h, Wp, p_w).transpose(
        0, 2, 4, 6, 1, 3, 5, 7)
    ref = xp.reshape(B * Tp * Hp * Wp, -1) @ weight.reshape(E, -1).T + bias
    ref = ref.reshape(B * Tp, Hp * Wp, E)

    assert out.shape == (B * Tp, Hp * Wp, E), out.shape
    # bf16 streamed operands + bf16 output store vs f32 reference.
    assert jnp.allclose(out.astype(jnp.float32), ref, atol=3e-1, rtol=5e-2), \
        "mismatch vs reference"
    print("KERNEL_OK")
</pallas_src>

<mosaic_0001>
module attributes {stable_mosaic.version = 11 : i64} {
  func.func @_patch_embed_kernel(%arg0: i32, %arg1: memref<16x128xbf16, #tpu.memory_space<vmem>>, %arg2: memref<128x32xbf16, #tpu.memory_space<vmem>>, %arg3: memref<1x32xf32, #tpu.memory_space<vmem>>, %arg4: memref<16x32xbf16, #tpu.memory_space<vmem>>) attributes {dimension_semantics = [#tpu.dimension_semantics<parallel>], iteration_bounds = array<i64: 4>, scalar_prefetch = 0 : i64, scratch_operands = 0 : i64, tpu.core_type = #tpu.core_type<tc>, window_params = [{transform_indices = @transform_0, window_bounds = array<i64: 16, 128>}, {pipeline_mode = #tpu.pipeline_mode<synchronous>, transform_indices = @transform_1, window_bounds = array<i64: 128, 32>}, {pipeline_mode = #tpu.pipeline_mode<synchronous>, transform_indices = @transform_2, window_bounds = array<i64: 1, 32>}, {transform_indices = @transform_3, window_bounds = array<i64: 16, 32>}]} {
    %c0 = arith.constant 0 : index
    %c0_0 = arith.constant 0 : index
    %0 = vector.load %arg1[%c0, %c0_0] : memref<16x128xbf16, #tpu.memory_space<vmem>>, vector<16x128xbf16>
    %c0_1 = arith.constant 0 : index
    %c0_2 = arith.constant 0 : index
    %1 = vector.load %arg2[%c0_1, %c0_2] : memref<128x32xbf16, #tpu.memory_space<vmem>>, vector<128x32xbf16>
    %cst = arith.constant dense<0.000000e+00> : vector<16x32xf32>
    %2 = tpu.matmul %0, %1, %cst {dimension_numbers = #tpu.dot_dimension_numbers<[1], [0], [0], [1], [0, 0, 1, 1], [], []>} : vector<16x128xbf16>, vector<128x32xbf16>, vector<16x32xf32> -> vector<16x32xf32>
    %c0_3 = arith.constant 0 : index
    %c0_4 = arith.constant 0 : index
    %3 = vector.load %arg3[%c0_3, %c0_4] : memref<1x32xf32, #tpu.memory_space<vmem>>, vector<1x32xf32>
    %4 = vector.broadcast %3 : vector<1x32xf32> to vector<16x32xf32>
    %5 = arith.addf %2, %4 : vector<16x32xf32>
    %6 = arith.truncf %5 : vector<16x32xf32> to vector<16x32xbf16>
    %c0_5 = arith.constant 0 : index
    %c0_6 = arith.constant 0 : index
    %7 = vector.load %arg4[%c0_5, %c0_6] : memref<16x32xbf16, #tpu.memory_space<vmem>>, vector<16x32xbf16>
    tpu.vector_store %arg4[%c0_5, %c0_6], %6 {strides = array<i32>} : memref<16x32xbf16, #tpu.memory_space<vmem>>, vector<16x32xbf16>,
    return
  }
  func.func @transform_0(%arg0: i32) -> (i32, i32) {
    %c0_i32 = arith.constant 0 : i32
    %c0_i32_0 = arith.constant 0 : i32
    return %arg0, %c0_i32 : i32, i32
  }
  func.func @transform_1(%arg0: i32) -> (i32, i32) {
    %c0_i32 = arith.constant 0 : i32
    %c0_i32_0 = arith.constant 0 : i32
    %c0_i32_1 = arith.constant 0 : i32
    return %c0_i32, %c0_i32_0 : i32, i32
  }
  func.func @transform_2(%arg0: i32) -> (i32, i32) {
    %c0_i32 = arith.constant 0 : i32
    %c0_i32_0 = arith.constant 0 : i32
    %c0_i32_1 = arith.constant 0 : i32
    return %c0_i32, %c0_i32_0 : i32, i32
  }
  func.func @transform_3(%arg0: i32) -> (i32, i32) {
    %c0_i32 = arith.constant 0 : i32
    %c0_i32_0 = arith.constant 0 : i32
    return %arg0, %c0_i32 : i32, i32
  }
}

</mosaic_0001>

<bundles_post_ra>
// kernel: patch_embed_forward.1
= control target key start
LH: loop header
LB: loop body
LE: loop exit
PB: predicated region body
PF: predicated region fallthrough
CT: control target
= control target key end

     0   :  { %8 = vsyncpa [#allocation3], 0  ;;  %s706_s0 = inlined_call_operand.vmem [shape: bf16[64,128], index: 0, kind: input, shape index: {}]   ;;  %s707_s1 = inlined_call_operand.vmem [shape: bf16[128,32], index: 1, kind: input, shape index: {}]   ;;  %s708_s2 = inlined_call_operand.vmem [shape: f32[1,32], index: 2, kind: input, shape index: {}]   ;;  %s709_s3 = inlined_call_operand.hbm [shape: bf16[64,32], index: 3, kind: output, shape index: {}]  }
   0x1   :  { %10 = vsyncpa [#allocation3 + $0x1], 0  ;;  %s577_s12 = smov 0   ;;  %s579_s13 = smov 0  }
   0x2   :  { %s581_s14 = smov 0   ;;  %s583_s15 = smov 0  }
   0x3 LB: > { %s598_s16 = sadd.s32 4294967295, %s550_s15   ;;  %s380_s17 = sadd.s32 4294967294, %s550_s15   ;;  %s550_s15 = sphi %s583_s15, %s715_s15   ;;  %s546_s14 = sphi %s581_s14, %s714_s14   ;;  %s542_s13 = sphi %s579_s13, %s713_s13   ;;  %s538_s12 = sphi %s577_s12, %s712_s12  }
   0x4   : > { %s602_s18 = sadd.s32 1, %s550_s15   ;;  %s91_s19 = sadd.s32 1, %s546_s14 }
   0x5   : > { %s88_s20 = ssub.s32 %s550_s15, %s602_s18  ;;  %p101_p0 = scmp.ne.s32.totalorder %s546_s14, %s542_s13 }
   0x6   : > { %p89_p1 = scmp.eq.s32.totalorder %s88_s20, 0  ;;  %p102_p2 = scmp.eq.s32.totalorder %s598_s16, 3 }
   0x7   : > { %p107_p3 = scmp.ne.s32.totalorder %s542_s13, %s538_s12  ;;  %p108_p4 = scmp.eq.s32.totalorder %s380_s17, 3 }
   0x8   : > { %s613_s21 = scalar_select %p89_p1, %s546_s14, %s91_s19  }
   0x9   : > { %p615_p5 = por %p102_p2, %p101_p0  ;;  %p619_p6 = por %p108_p4, %p107_p3 }
   0xa   : > { %p383_p7 = scmp.ge.s32.totalorder %s550_s15, 1  ;;  %p141_p8 = scmp.lt.s32.totalorder %s550_s15, 5 }
   0xc   : > { %p142_p9 = pnand %p383_p7, %p141_p8 }
   0xd   : > { %v479_v0 = vld [vmem:[%s707_s1] sm:$0xff] (!%p142_p9)   ;;  %v552_v1 = vmov (!%p142_p9), 0.0   ;;  %v480_v2 = vld [vmem:[%s707_s1 + $0x8] sm:$0xff] (!%p142_p9)   ;;  %vm553_vm0 = vmmov (!%p142_p9), 0   ;;  %s385_s28 = sshll.u32 (!%p142_p9), %s598_s16, 1  ;;  %v481_v3 = vld [vmem:[%s707_s1 + $0x10] sm:$0xff] (!%p142_p9)  }
   0xe   : > { %145 = sbr.rel (%p142_p9) target bundleno = 279 (0x117), region = 32  ;;  %416 = vmatprep.subr.bf16.mxu0 (!%p142_p9), %v552_v1  ;;  %432 = vmatprep.mubr.msk.bf16.mxu0 (!%p142_p9), %vm553_vm0, %v552_v1  ;;  %p166_p10 = scmp.lt.s32.totalorder (!%p142_p9), %s385_s28, 7  ;;  %v482_v4 = vld [vmem:[%s707_s1 + $0x18] sm:$0xff] (!%p142_p9)   ;;  %v483_v5 = vld [vmem:[%s707_s1 + $0x20] sm:$0xff] (!%p142_p9)   ;;  %v484_v6 = vld [vmem:[%s707_s1 + $0x28] sm:$0xff] (!%p142_p9)   ;;  %vm301_vm1 = vcmask (!%p142_p9), 257024  }
   0xf   : > { %417 = vmatpush3.bf16.msra.mxu0 (!%p142_p9), %v479_v0  ;;  %v485_v7 = vld [vmem:[%s707_s1 + $0x30] sm:$0xff] (!%p142_p9)   ;;  %v486_v8 = vld [vmem:[%s707_s1 + $0x38] sm:$0xff] (!%p142_p9)   ;;  %s162_s27 = sand.u32 (!%p142_p9), 1, %s542_s13   ;;  %v387_v10 = vld [vmem:[%s708_s2] ss:$0 sm:$0xff] (!%p142_p9)  ;;  %s406_s6 = sshll.u32 (!%p142_p9), %s598_s16, 7 }
  0x10   : > { %418 = vmatprep.subr.bf16.mxu0 (!%p142_p9), %v552_v1  ;;  %s663_s9 = scalar_lea.hbm (!%p142_p9), %s709_s3, %s406_s6  ;;  %s665_s10 = scalar_lea.sflag (!%p142_p9), [#allocation3], %s162_s27 }
  0x11   : > { %s554_s11 = smov (!%p142_p9), [#allocation2]  }
  0x12   : > { %s492_s17 = sshll.u32 (!%p142_p9), %s554_s11, 4  ;;  %s493_s17 = int_to_ptr.vmem [resolvable:$false] %s492_s17 }
  0x13   : > { %419 = vmatpush3.bf16.msra.mxu0 (!%p142_p9), %v480_v2  ;;  %s494_s19 = scalar_lea.vmem (!%p142_p9), %s493_s17, 256 }
  0x14   : > { %420 = vmatprep.subr.bf16.mxu0 (!%p142_p9), %v552_v1 }
  0x15   : > { %s717_s28 = smov (!%p166_p10, %s385_s28), 7 }
  0x16   : > { %s386_s4 = sshll.u32 %s717_s28, 2  ;;  %s384_s28 = sshll.u32 %s162_s27, 3 }
  0x17   : > { %s169_s7 = scalar_lea.vmem %s706_s0, %s386_s4  ;;  %421 = vmatpush3.bf16.msra.mxu0 %v481_v3  ;;  %s164_s4 = scalar_lea.vmem [#allocation2], %s384_s28 }
  0x18   : > { %422 = vmatprep.subr.bf16.mxu0 %v552_v1  ;;  %v487_v9 = vld [vmem:[%s169_s7] sm:$0xff]   ;;  %s318_s5 = sshll.u32 %s164_s4, 4  ;;  %s658_s5 = int_to_ptr.vmem [resolvable:$true] %s318_s5 }
  0x19   : > { %s488_s16 = scalar_lea.vmem %s658_s5, 128  ;;  %p495_p0 = scmp.lt.s32.totalorder %s658_s5, %s493_s17 }
  0x1a   : > { %p489_p11 = scmp.ne.s32.totalorder %s658_s5, %s488_s16  ;;  %p496_p1 = scmp.lt.s32.totalorder %s494_s19, %s488_s16 }
  0x1b   : > { %423 = vmatpush3.bf16.msra.mxu0 %v482_v4 }
  0x1c   : > { %424 = vmatprep.subr.bf16.mxu0 %v552_v1  ;;  %p490_p12 = pnand %p489_p11, %p615_p5  ;;  %p497_p2 = por %p496_p1, %p495_p0 }
  0x1e   : > { %p491_p13 = pneg %p490_p12 }
  0x1f   : > { %425 = vmatpush3.bf16.msra.mxu0 %v483_v5 }
  0x20   : > { %426 = vmatprep.subr.bf16.mxu0 %v552_v1  ;;  %p498_p3 = pnand %p497_p2, %p491_p13 }
  0x23   : > { %427 = vmatpush3.bf16.msra.mxu0 %v484_v6 }
  0x24   : > { %428 = vmatprep.subr.bf16.mxu0 %v552_v1 }
  0x27   : > { %429 = vmatpush3.bf16.msra.mxu0 %v485_v7 }
  0x28   : > { %430 = vmatprep.subr.bf16.mxu0 %v552_v1 }
  0x2b   : > { %431 = vmatpush3.bf16.msra.mxu0 %v486_v8 }
  0x2e   : > { %433 = vmatmul.mubr.bf16.vlgmr.msra.gmra.mrb[0].mxu0 %v487_v9 }
 0x101   : > { %v286_v11 = vpop.f32.mrb[0].mxu0 }
 0x102   : > { %v287_v12 = vadd.f32 %v387_v10, %v286_v11  ;;  %v434_v13 = vpop.f32.mrb[1].mxu0 }
 0x103   : > { %v289_v14 = vpop.f32.mrb[2].mxu0 }
 0x104   : > { %v404_v15 = vpack.c.bf16 %v287_v12, %v287_v12  ;;  %v290_v16 = vadd.f32 %v387_v10, %v289_v14  ;;  %v435_v17 = vpop.f32.mrb[3].mxu0 }
 0x106   : > { %302 = vst.msk [vmem:[%s164_s4] sm:$0xf] %vm301_vm1, %v404_v15  ;;  %v405_v18 = vpack.c.bf16 %v290_v16, %v290_v16 }
 0x108   : > { %303 = vst.msk [vmem:[%s164_s4 + $0x4] sm:$0xf] %vm301_vm1, %v405_v18 }
 0x109   : > { %501 = shalt.err (!%p498_p3)
}
 0x10a   : > { %s502_s20 = scalar_lea.hbm %s663_s9, 128  ;;  %s506_s26 = scalar_lea.hbm %s709_s3, 512 }
 0x10b   : > { %p503_p4 = scmp.ne.s32.totalorder %s663_s9, %s502_s20  ;;  %p507_p9 = scmp.lt.u32.totalorder %s663_s9, %s709_s3 }
 0x10c   : > { %p508_p10 = scmp.lt.u32.totalorder %s506_s26, %s502_s20  ;;  %p510_p12 = scmp.lt.u32.totalorder %s502_s20, %s663_s9 }
 0x10d   : > { %p504_p7 = pnand %p503_p4, %p615_p5 }
 0x10e   : > { %p509_p11 = por %p508_p10, %p507_p9 }
 0x10f   : > { %p505_p8 = pneg %p504_p7 }
 0x110   : > { %p511_p13 = por %p510_p12, %p509_p11 }
 0x112   : > { %p512_p0 = pnand %p511_p13, %p505_p8 }
 0x114   : > { %515 = shalt.err (!%p512_p0)
}
 0x115   : > { %s555_s29 = smov 64   ;;  %s556_s30 = smov 4  }
 0x116   : > { %436 = dma.vmem_to_hbm [thread:$0]  (%p615_p5), %s658_s5, 128, %s663_s9, %s665_s10, %s555_s29, %s555_s29, %s556_s30  }
 0x117 PF: > { %p442_p1 = scmp.ge.s32.totalorder %s550_s15, 2  ;;  %s333_s4 = sand.u32 1, %s538_s12  }
 0x118   : > { %s334_s6 = scalar_lea.sflag [#allocation3], %s333_s4 }
 0x119   : > { %p439_p2 = pnand %p442_p1, %p619_p6 }
 0x11b   : > { %533 = dma.done.wait (!%p439_p2), %s334_s6, 128  }
 0x11c   : > { %535 = vsyncadd (!%p439_p2), %s334_s6, 4294967168  ;;  %p13_p3 = scmp.ge.s32.totalorder %s602_s18, 6   ;;  %s712_s12 = smov %s542_s13 }
 0x11d   : > { %s713_s13 = smov %s546_s14  ;;  %s714_s14 = smov %s613_s21 }
 0x11e   : > { %s715_s15 = smov %s602_s18  ;;  %15 = sbr.rel (!%p13_p3) target bundleno = 3 (0x3), region = 67 }
 0x125   :  { %339 = vsyncpa [#allocation3], 1 }
 0x126   :  { %341 = vsyncpa [#allocation3 + $0x1], 1 }

</bundles_post_ra>
